<compile_context>
chip_gen: v7x
topology: tpu7x:2x2x1
jax: 0.10.0
libtpu: 0.0.40
codegen_flags: <defaults>
</compile_context>

<pallas_src>
import jax
import jax.numpy as jnp
from jax.experimental import pallas as pl
from jax.experimental.pallas import tpu as pltpu


def _round_up(x, m):
    return ((x + m - 1) // m) * m


def _vmem_limit_bytes():
    """Generation-aware vmem_limit_bytes (v5e/v6e: ~100 MiB, v7x: ~56 MiB)."""
    cap = 64 << 20  # conservative fallback (safe on every generation)
    try:
        info = pltpu.get_tpu_info()
        cap = int(getattr(info, "vmem_capacity_bytes", cap)) or cap
    except Exception:
        pass
    return int(min(cap - cap // 8, 100 << 20))


def _choose_blocks(B, L, H, itemsize, vmem_limit,
                   block_b=None, block_l=None, block_h=None):
    """Pick (tb, tl, th) so the double-buffered values block fits the budget."""

    def padded_bytes(tb, tl, th):
        # VMEM footprint of one (tb, tl, th) values tile: minor dim pads to
        # 128 lanes, second-minor dim to 8 sublanes.
        return tb * _round_up(tl, 8) * _round_up(th, 128) * itemsize

    target = max(1 << 20, min(16 << 20, vmem_limit // 4))
    max_bytes = max(target, min(32 << 20, vmem_limit // 3))

    th = H if block_h is None else block_h
    tl = L if block_l is None else block_l

    if block_b is not None:
        tb = block_b
    else:
        row = max(1, padded_bytes(1, tl, th))
        tb = max(1, target // row)
        if tb >= B:
            tb = B
        else:
            tb = max(8, (tb // 8) * 8)   # tb < B must be a sublane multiple
            if tb >= B:
                tb = B
            else:
                while tb > 8 and padded_bytes(tb, tl, th) > max_bytes:
                    tb -= 8

    # Even the minimal batch tile is over budget -> stream the L-reduction in
    # 128-aligned chunks (w's lane dim must stay a multiple of 128).
    if block_l is None and padded_bytes(tb, tl, th) > max_bytes and L > 128:
        denom = max(1, tb * _round_up(th, 128) * itemsize)
        tl = (target // denom) // 128 * 128
        tl = max(128, min(tl, L))

    # Still over budget (very wide H) -> split the hidden/output axis too.
    if block_h is None and padded_bytes(tb, tl, th) > max_bytes and H > 128:
        denom = max(1, tb * _round_up(tl, 8) * itemsize)
        th = (target // denom) // 128 * 128
        th = max(128, min(th, H))

    # Make sure both TensorCores of a megacore part (v7x) get parallel steps.
    if (block_b is None and block_h is None and th == H and H >= 256
            and pl.cdiv(B, tb) * pl.cdiv(H, th) < 2):
        th = _round_up((H + 1) // 2, 128)

    return tb, tl, th


def _make_kernel(L, tl, mask_ragged_l):
    def kernel(w_ref, v_ref, out_ref, acc_ref):
        # w_ref : (tb, tl)      softmax weights (zero at masked positions)
        # v_ref : (tb, tl, th)  values block
        # out   : (tb, th)      lane-dense output block
        # acc   : (tb, th) f32  accumulator, resident across the L grid axis
        l = pl.program_id(2)

        @pl.when(l == 0)
        def _init():
            acc_ref[...] = jnp.zeros_like(acc_ref)

        w_blk = w_ref[...]
        v_blk = v_ref[...]
        if mask_ragged_l:
            # The last L chunk extends past L: zero both operands there so the
            # stale VMEM contents (arbitrary bits, possibly NaN/Inf) cannot
            # contaminate valid rows of the accumulation.
            rem = L - l * tl
            w_blk = jnp.where(
                jax.lax.broadcasted_iota(jnp.int32, w_blk.shape, 1) < rem,
                w_blk, jnp.zeros_like(w_blk))
            v_blk = jnp.where(
                jax.lax.broadcasted_iota(jnp.int32, v_blk.shape, 1) < rem,
                v_blk, jnp.zeros_like(v_blk))

        # Batched (1, tl) x (tl, th) matmul on the MXU with f32 accumulation;
        # no (tb, tl, th) f32 temporary.  HIGHEST precision is free: the kernel
        # is HBM-bound with huge MXU slack.
        part = jnp.einsum(
            "bql,blh->bqh",
            w_blk[:, None, :],
            v_blk,
            preferred_element_type=jnp.float32,
            precision=jax.lax.Precision.HIGHEST,
        )                                    # (tb, 1, th) f32
        acc_ref[...] += part[:, 0, :]

        @pl.when(l == pl.num_programs(2) - 1)
        def _finalize():
            out_ref[...] = acc_ref[...].astype(out_ref.dtype)

    return kernel


def embedding_weighted_average(emb_weight, inp, values, lengths=None, mask=None,
                               block_b=None, block_l=None, block_h=None):
    """emb_weight: (V, 1) float. inp: (B, L) int. values: (B, L, H) float."""
    B, L = inp.shape
    H = values.shape[-1]
    dtype = values.dtype

    if mask is None:
        if lengths is None:
            raise ValueError("mask and lengths cannot both be None")
        lengths = lengths.reshape(B, 1).astype(jnp.int32)
        mask = jnp.arange(L, dtype=jnp.int32)[None, :] < lengths      # (B, L)
    else:
        mask = mask.reshape(B, L) != 0

    # Cheap glue (touches only B*L scalars): embedding gather + masked softmax.
    scores = jnp.take(emb_weight[:, 0], inp, axis=0).astype(jnp.float32)  # (B, L)
    scores = jnp.where(mask, scores, -jnp.inf)
    w = jax.nn.softmax(scores, axis=-1).astype(dtype)                     # (B, L)
    # softmax of -inf-masked scores is already 0 at invalid positions, so the
    # PyTorch `* mask` inside the reduction is redundant and dropped.

    vmem_limit = _vmem_limit_bytes()
    tb, tl, th = _choose_blocks(B, L, H, jnp.dtype(dtype).itemsize, vmem_limit,
                                block_b, block_l, block_h)
    nb = pl.cdiv(B, tb)
    nh = pl.cdiv(H, th)
    nl = pl.cdiv(L, tl)

    kernel = _make_kernel(L=L, tl=tl, mask_ragged_l=(L % tl != 0))

    out = pl.pallas_call(
        kernel,
        out_shape=jax.ShapeDtypeStruct((B, H), dtype),
        grid_spec=pltpu.PrefetchScalarGridSpec(
            num_scalar_prefetch=0,
            grid=(nb, nh, nl),
            in_specs=[
                pl.BlockSpec((tb, tl), lambda i, j, l: (i, l)),
                pl.BlockSpec((tb, tl, th), lambda i, j, l: (i, l, j)),
            ],
            out_specs=pl.BlockSpec((tb, th), lambda i, j, l: (i, j)),
            scratch_shapes=[pltpu.VMEM((tb, th), jnp.float32)],
        ),
        compiler_params=pltpu.CompilerParams(
            dimension_semantics=("parallel", "parallel", "arbitrary"),
            vmem_limit_bytes=int(vmem_limit),
        ),
    )(w, values)
    return out


def _reference(emb_weight, inp, values, lengths):
    B, L = inp.shape
    mask = (jnp.arange(L)[None, :] < lengths.reshape(B, 1)).astype(values.dtype)
    scores = jnp.take(emb_weight[:, 0], inp, axis=0)[..., None]           # (B, L, 1)
    s = jnp.where(mask[..., None] > 0, scores, -jnp.inf)
    w = jax.nn.softmax(s, axis=1)                                         # (B, L, 1)
    return jnp.sum(w * values * mask[..., None], axis=1)                  # (B, H)


if __name__ == "__main__":
    key = jax.random.PRNGKey(0)
    ks = jax.random.split(key, 12)

    # Case 1: small shapes matching the module's forward (B=2, L=8, H=32).
    B, L, H, V = 2, 8, 32, 50
    emb_w = jax.random.normal(ks[0], (V, 1), jnp.float32)     # 'random' init mode
    inp = jax.random.randint(ks[1], (B, L), 0, V, jnp.int32)
    vals = jax.random.normal(ks[2], (B, L, H), jnp.float32)
    lens = jnp.array([[5], [8]], jnp.int32)
    out = jax.block_until_ready(
        embedding_weighted_average(emb_w, inp, vals, lengths=lens))
    ref = _reference(emb_w, inp, vals, lens)
    assert out.shape == (B, H)
    assert jnp.allclose(out, ref, atol=1e-4, rtol=1e-4), "mismatch (small)"

    # Case 2: multi-block batch tiling with a ragged last batch block (20 % 8 != 0).
    B2, L2, H2, V2 = 20, 128, 256, 100
    emb_w2 = jax.random.normal(ks[3], (V2, 1), jnp.float32)
    inp2 = jax.random.randint(ks[4], (B2, L2), 0, V2, jnp.int32)
    vals2 = jax.random.normal(ks[5], (B2, L2, H2), jnp.float32)
    lens2 = jax.random.randint(ks[6], (B2, 1), 1, L2 + 1, jnp.int32)
    out2 = jax.block_until_ready(
        embedding_weighted_average(emb_w2, inp2, vals2, lengths=lens2, block_b=8))
    ref2 = _reference(emb_w2, inp2, vals2, lens2)
    assert out2.shape == (B2, H2)
    assert jnp.allclose(out2, ref2, atol=1e-4, rtol=1e-4), "mismatch (ragged batch)"

    # Case 3: L-split accumulator path with a ragged last L chunk (384 % 256 != 0).
    B3, L3, H3, V3 = 8, 384, 128, 64
    emb_w3 = jax.random.normal(ks[7], (V3, 1), jnp.float32)
    inp3 = jax.random.randint(ks[8], (B3, L3), 0, V3, jnp.int32)
    vals3 = jax.random.normal(ks[9], (B3, L3, H3), jnp.float32)
    lens3 = jax.random.randint(ks[10], (B3, 1), 1, L3 + 1, jnp.int32)
    out3 = jax.block_until_ready(
        embedding_weighted_average(emb_w3, inp3, vals3, lengths=lens3, block_l=256))
    ref3 = _reference(emb_w3, inp3, vals3, lens3)
    assert jnp.allclose(out3, ref3, atol=1e-4, rtol=1e-4), "mismatch (L-split)"

    # Case 4: automatic H-split so both TensorCores of a megacore part get work.
    B4, L4, H4, V4 = 2, 16, 256, 32
    emb_w4 = jax.random.normal(ks[11], (V4, 1), jnp.float32)
    inp4 = jax.random.randint(jax.random.PRNGKey(1), (B4, L4), 0, V4, jnp.int32)
    vals4 = jax.random.normal(jax.random.PRNGKey(2), (B4, L4, H4), jnp.float32)
    lens4 = jnp.array([[3], [16]], jnp.int32)
    out4 = jax.block_until_ready(
        embedding_weighted_average(emb_w4, inp4, vals4, lengths=lens4))
    ref4 = _reference(emb_w4, inp4, vals4, lens4)
    assert jnp.allclose(out4, ref4, atol=1e-4, rtol=1e-4), "mismatch (H-split)"

    print("KERNEL_OK")
</pallas_src>

<mosaic_0001>
module attributes {stable_mosaic.version = 11 : i64} {
  func.func @kernel(%arg0: i32, %arg1: i32, %arg2: i32, %arg3: memref<2x8xf32, #tpu.memory_space<vmem>>, %arg4: memref<2x8x32xf32, #tpu.memory_space<vmem>>, %arg5: memref<2x32xf32, #tpu.memory_space<vmem>>, %arg6: memref<2x32xf32, #tpu.memory_space<vmem>>) attributes {dimension_semantics = [#tpu.dimension_semantics<parallel>, #tpu.dimension_semantics<parallel>, #tpu.dimension_semantics<arbitrary>], iteration_bounds = array<i64: 1, 1, 1>, scalar_prefetch = 0 : i64, scratch_operands = 1 : i64, tpu.core_type = #tpu.core_type<tc>, window_params = [{transform_indices = @transform_0, window_bounds = array<i64: 2, 8>}, {transform_indices = @transform_1, window_bounds = array<i64: 2, 8, 32>}, {transform_indices = @transform_2, window_bounds = array<i64: 2, 32>}]} {
    %c0_i32 = arith.constant 0 : i32
    %0 = arith.cmpi eq, %arg2, %c0_i32 : i32
    %1 = arith.extui %0 : i1 to i32
    %c0_i32_0 = arith.constant 0 : i32
    %2 = arith.cmpi ne, %1, %c0_i32_0 : i32
    scf.if %2 {
      %cst_11 = arith.constant 0.000000e+00 : f32
      %14 = vector.broadcast %cst_11 : f32 to vector<2x32xf32>
      %c0_12 = arith.constant 0 : index
      %c0_13 = arith.constant 0 : index
      %15 = vector.load %arg6[%c0_12, %c0_13] : memref<2x32xf32, #tpu.memory_space<vmem>>, vector<2x32xf32>
      tpu.vector_store %arg6[%c0_12, %c0_13], %14 {strides = array<i32>} : memref<2x32xf32, #tpu.memory_space<vmem>>, vector<2x32xf32>,
    } else {
    }
    %c0 = arith.constant 0 : index
    %c0_1 = arith.constant 0 : index
    %3 = vector.load %arg3[%c0, %c0_1] : memref<2x8xf32, #tpu.memory_space<vmem>>, vector<2x8xf32>
    %c0_2 = arith.constant 0 : index
    %c0_3 = arith.constant 0 : index
    %c0_4 = arith.constant 0 : index
    %4 = vector.load %arg4[%c0_2, %c0_3, %c0_4] : memref<2x8x32xf32, #tpu.memory_space<vmem>>, vector<2x8x32xf32>
    %5 = vector.shape_cast %3 : vector<2x8xf32> to vector<2x1x8xf32>
    "tpu.trace_start"() <{level = 10 : i32, message = "bql,blh->bqh"}> : () -> ()
    %cst = arith.constant dense<0.000000e+00> : vector<2x1x32xf32>
    %6 = tpu.matmul %5, %4, %cst {dimension_numbers = #tpu.dot_dimension_numbers<[2], [1], [1], [2], [0, 0, 0, 1, 1, 2], [0], [0]>, precision = #tpu.contract_precision<fp32>} : vector<2x1x8xf32>, vector<2x8x32xf32>, vector<2x1x32xf32> -> vector<2x1x32xf32>
    "tpu.trace_stop"() : () -> ()
    %c0_5 = arith.constant 0 : index
    %c0_6 = arith.constant 0 : index
    %7 = vector.load %arg6[%c0_5, %c0_6] : memref<2x32xf32, #tpu.memory_space<vmem>>, vector<2x32xf32>
    %8 = vector.shape_cast %6 : vector<2x1x32xf32> to vector<2x32xf32>
    %9 = arith.addf %7, %8 : vector<2x32xf32>
    %c0_7 = arith.constant 0 : index
    %c0_8 = arith.constant 0 : index
    %10 = vector.load %arg6[%c0_7, %c0_8] : memref<2x32xf32, #tpu.memory_space<vmem>>, vector<2x32xf32>
    tpu.vector_store %arg6[%c0_7, %c0_8], %9 {strides = array<i32>} : memref<2x32xf32, #tpu.memory_space<vmem>>, vector<2x32xf32>,
    %c0_i32_9 = arith.constant 0 : i32
    %11 = arith.cmpi eq, %arg2, %c0_i32_9 : i32
    %12 = arith.extui %11 : i1 to i32
    %c0_i32_10 = arith.constant 0 : i32
    %13 = arith.cmpi ne, %12, %c0_i32_10 : i32
    scf.if %13 {
      %c0_11 = arith.constant 0 : index
      %c0_12 = arith.constant 0 : index
      %14 = vector.load %arg6[%c0_11, %c0_12] : memref<2x32xf32, #tpu.memory_space<vmem>>, vector<2x32xf32>
      %c0_13 = arith.constant 0 : index
      %c0_14 = arith.constant 0 : index
      %15 = vector.load %arg5[%c0_13, %c0_14] : memref<2x32xf32, #tpu.memory_space<vmem>>, vector<2x32xf32>
      tpu.vector_store %arg5[%c0_13, %c0_14], %14 {strides = array<i32>} : memref<2x32xf32, #tpu.memory_space<vmem>>, vector<2x32xf32>,
    } else {
    }
    return
  }
  func.func @transform_0(%arg0: i32, %arg1: i32, %arg2: i32) -> (i32, i32) {
    %c0_i32 = arith.constant 0 : i32
    return %arg0, %arg2 : i32, i32
  }
  func.func @transform_1(%arg0: i32, %arg1: i32, %arg2: i32) -> (i32, i32, i32) {
    %c0_i32 = arith.constant 0 : i32
    return %arg0, %arg2, %arg1 : i32, i32, i32
  }
  func.func @transform_2(%arg0: i32, %arg1: i32, %arg2: i32) -> (i32, i32) {
    %c0_i32 = arith.constant 0 : i32
    return %arg0, %arg1 : i32, i32
  }
}

</mosaic_0001>

<bundles_post_ra>
// kernel: tpu_custom_call.1
= control target key start
LH: loop header
LB: loop body
LE: loop exit
PB: predicated region body
PF: predicated region fallthrough
CT: control target
= control target key end

     0   :  { %7 = vsyncpa [#allocation4], 0  ;;  %s1291_s0 = inlined_call_operand.hbm [shape: f32[2,8], index: 0, kind: input, shape index: {}]   ;;  %s1292_s1 = inlined_call_operand.hbm [shape: f32[2,8,32], index: 1, kind: input, shape index: {}]   ;;  %s1293_s2 = inlined_call_operand.hbm [shape: f32[2,32], index: 2, kind: output, shape index: {}]  }
   0x1   :  { %8 = vsyncpa [#allocation7], 0 }
   0x2   :  { %9 = vsyncpa [#allocation5], 0  ;;  %s1183_s9 = smov [#allocation3]   ;;  %s1184_s11 = smov [#allocation6]  }
   0x3   :  { %s16_s10 = sshll.u32 %s1183_s9, 4  ;;  %s25_s12 = sshll.u32 %s1184_s11, 4  ;;  %s17_s10 = int_to_ptr.vmem [resolvable:$true] %s16_s10  ;;  %s1206_s12 = int_to_ptr.vmem [resolvable:$true] %s25_s12 }
   0x4   :  { %s1111_s15 = scalar_lea.hbm %s1291_s0, 32 }
   0x5   :  { %p1112_p0 = scmp.ne.s32.totalorder %s1291_s0, %s1111_s15  ;;  %p1115_p1 = scmp.lt.u32.totalorder %s1111_s15, %s1291_s0 }
   0x7   :  { %p1117_p2 = pnand %p1115_p1, %p1112_p0 }
   0x9   :  { %1120 = shalt.err (!%p1117_p2)
}
   0xa   :  { %s1121_s20 = scalar_lea.vmem %s17_s10, 32  ;;  %p1126_p4 = scmp.lt.s32.totalorder %s17_s10, %s17_s10 }
   0xb   :  { %p1122_p3 = scmp.ne.s32.totalorder %s17_s10, %s1121_s20  ;;  %p1127_p5 = scmp.lt.s32.totalorder %s1121_s20, %s1121_s20 }
   0xd   :  { %p1128_p6 = por %p1127_p5, %p1126_p4 }
   0xf   :  { %p1129_p7 = pnand %p1128_p6, %p1122_p3 }
  0x11   :  { %1132 = shalt.err (!%p1129_p7)
}
  0x12   :  { %19 = dma.hbm_to_vmem [thread:$0]  %s1291_s0, 32, %s17_s10, [#allocation4]  }
  0x13   :  { %s1133_s25 = scalar_lea.hbm %s1292_s1, 256 }
  0x14   :  { %p1134_p8 = scmp.ne.s32.totalorder %s1292_s1, %s1133_s25  ;;  %p1137_p9 = scmp.lt.u32.totalorder %s1133_s25, %s1292_s1 }
  0x16   :  { %p1139_p10 = pnand %p1137_p9, %p1134_p8 }
  0x18   :  { %1142 = shalt.err (!%p1139_p10)
}
  0x19   :  { %s1143_s30 = scalar_lea.vmem %s1206_s12, 256  ;;  %p1148_p12 = scmp.lt.s32.totalorder %s1206_s12, %s1206_s12 }
  0x1a   :  { %p1144_p11 = scmp.ne.s32.totalorder %s1206_s12, %s1143_s30  ;;  %p1149_p13 = scmp.lt.s32.totalorder %s1143_s30, %s1143_s30 }
  0x1c   :  { %p1150_p0 = por %p1149_p13, %p1148_p12 }
  0x1e   :  { %p1151_p1 = pnand %p1150_p0, %p1144_p11 }
  0x20   :  { %1154 = shalt.err (!%p1151_p1)
}
  0x21   :  { %s1185_s0 = smov 128   ;;  %s1186_s3 = smov 8  }
  0x22   :  { %31 = dma.hbm_to_vmem [thread:$0]  %s1292_s1, 256, %s1206_s12, [#allocation7], %s1185_s0, %s1185_s0, %s1186_s3  }
  0x23   :  { %1177 = dma.done.wait [#allocation4], 32  }
  0x24   :  { %1178 = vsyncadd [#allocation4], 4294967264 }
  0x25   :  { %1179 = dma.done.wait [#allocation7], 256  }
  0x26   :  { %1180 = vsyncadd [#allocation7], 4294967040  ;;  %v59_v0 = vlaneseq  ;;  %v1187_v1 = vmov 0.0   ;;  %vm1188_vm0 = vmmov 0   ;;  %v1189_v2 = vmov 1966171168  }
  0x27   :  { %1023 = vmatprep.subr.mxu0 %v1187_v1  ;;  %1025 = vmatprep.mubr.msk.f32.mxu0 %vm1188_vm0, %v1187_v1  ;;  %v57_v3 = vunpack.c.l.s4 %v1189_v2  ;;  %vm70_vm1 = vcmask 64512   ;;  %v45_v7 = vld [vmem:[#allocation6] sm:$0xff]  ;;  %v998_v8 = vld.sshfl [vmem:[#allocation3] sm:$0x11 pattern:$0x75316420] }
  0x28   :  { %1053 = vmatprep.subr.mxu1 %v1187_v1  ;;  %v60_v4 = vshrl.u32 %v59_v0, 7  ;;  %1055 = vmatprep.mubr.msk.f32.mxu1 %vm1188_vm0, %v1187_v1  ;;  %v46_v9 = vld [vmem:[#allocation6 + $0x8] sm:$0xff]  ;;  %v74_v10 = vand.u32 4294901760, %v45_v7  ;;  %v55_v13 = vcombine.high %v998_v8, %v998_v8  ;;  %vm42_vm2 = vcmask 254976   ;;  %s1190_s1 = smov [#allocation8]  }
  0x29   :  { %v58_v5 = vunpack.c.0.s8 %v57_v3  ;;  %v522_v12 = vand.u32 4294901760, %v46_v9  ;;  %43 = vst.msk [vmem:[#allocation2] sm:$0x3] %vm42_vm2, %v1187_v1  ;;  %vm971_vm3 = vcmask 1041409   ;;  %s988_s6 = sshll.u32 %s1190_s1, 4  ;;  %s989_s6 = int_to_ptr.vmem [resolvable:$true] %s988_s6 }
  0x2a   :  { %1024 = vmatpush3.msra.mxu0 %v74_v10  ;;  %v151_v14 = vsub.f32 %v45_v7, %v74_v10  ;;  %s1155_s7 = scalar_lea.vmem %s989_s6, 32  ;;  %p1160_p3 = scmp.lt.s32.totalorder %s989_s6, %s989_s6 }
  0x2b   :  { %v61_v6 = vsub.s32 %v58_v5, %v60_v4  ;;  %1054 = vmatpush3.msra.mxu1 %v522_v12  ;;  %v599_v16 = vsub.f32 %v46_v9, %v522_v12  ;;  %1028 = vmatprep.subr.mxu0 %v1187_v1  ;;  %p1156_p2 = scmp.ne.s32.totalorder %s989_s6, %s1155_s7  ;;  %p1161_p4 = scmp.lt.s32.totalorder %s1155_s7, %s1155_s7 }
  0x2c   :  { %1058 = vmatprep.subr.mxu1 %v1187_v1  ;;  %v152_v21 = vand.u32 4294901760, %v151_v14 }
  0x2d   :  { %v62_v11 = vrot.slane %v998_v8, %v61_v6  ;;  %v69_v17 = vrot.slane %v55_v13, %v61_v6  ;;  %v600_v20 = vand.u32 4294901760, %v599_v16  ;;  %p1162_p5 = por %p1161_p4, %p1160_p3 }
  0x2e   :  { %v153_v24 = vsub.f32 %v151_v14, %v152_v21 }
  0x2f   :  { %v71_v15 = vsel %vm70_vm1, %v62_v11, 0  ;;  %v519_v19 = vsel %vm70_vm1, %v69_v17, 0  ;;  %v601_v27 = vsub.f32 %v599_v16, %v600_v20  ;;  %p1163_p6 = pnand %p1162_p5, %p1156_p2 }
  0x30   :  { %v139_v18 = vand.u32 4294901760, %v71_v15  ;;  %v587_v23 = vand.u32 4294901760, %v519_v19  ;;  %v154_v30 = vand.u32 4294901760, %v153_v24  ;;  %v967_v40 = vld [vmem:[#allocation2] sm:$0x3] }
  0x31   :  { %v602_v33 = vand.u32 4294901760, %v601_v27 }
  0x32   :  { %v140_v22 = vsub.f32 %v71_v15, %v139_v18  ;;  %v588_v26 = vsub.f32 %v519_v19, %v587_v23 }
  0x34   :  { %v141_v25 = vand.u32 4294901760, %v140_v22  ;;  %v589_v29 = vand.u32 4294901760, %v588_v26 }
  0x36   :  { %v142_v28 = vsub.f32 %v140_v22, %v141_v25  ;;  %v590_v32 = vsub.f32 %v588_v26, %v589_v29 }
  0x38   :  { %v143_v31 = vand.u32 4294901760, %v142_v28  ;;  %v591_v34 = vand.u32 4294901760, %v590_v32 }
  0x3a   :  { %1026 = vmatmul.mubr.f32.vlgmr.msra.gmra.mrb[0].mxu0 %v143_v31  ;;  %1056 = vmatmul.mubr.f32.vlgmr.msra.gmra.mrb[0].mxu1 %v591_v34 }
  0x3b   :  { %1029 = vmatpush3.msra.mxu0 %v154_v30  ;;  %1030 = vmatprep.mubr.msk.f32.mxu0 %vm1188_vm0, %v1187_v1 }
  0x3c   :  { %1033 = vmatprep.subr.mxu0 %v1187_v1  ;;  %1059 = vmatpush3.msra.mxu1 %v602_v33 }
  0x3d   :  { %1060 = vmatprep.mubr.msk.f32.mxu1 %vm1188_vm0, %v1187_v1  ;;  %1063 = vmatprep.subr.mxu1 %v1187_v1 }
  0x42   :  { %1031 = vmatmul.mubr.f32.vlgmr.msra.gmra.mrb[0].mxu0 %v139_v18  ;;  %1061 = vmatmul.mubr.f32.vlgmr.msra.gmra.mrb[0].mxu1 %v587_v23 }
  0x43   :  { %1034 = vmatpush3.msra.mxu0 %v151_v14  ;;  %1035 = vmatprep.mubr.msk.f32.mxu0 %vm1188_vm0, %v1187_v1 }
  0x44   :  { %1038 = vmatprep.subr.mxu0 %v1187_v1  ;;  %1064 = vmatpush3.msra.mxu1 %v599_v16 }
  0x45   :  { %1065 = vmatprep.mubr.msk.f32.mxu1 %vm1188_vm0, %v1187_v1  ;;  %1068 = vmatprep.subr.mxu1 %v1187_v1 }
  0x4a   :  { %1036 = vmatmul.mubr.f32.vlgmr.msra.gmra.mrb[0].mxu0 %v140_v22  ;;  %1066 = vmatmul.mubr.f32.vlgmr.msra.gmra.mrb[0].mxu1 %v588_v26 }
  0x4b   :  { %1039 = vmatpush3.msra.mxu0 %v74_v10  ;;  %1040 = vmatprep.mubr.msk.f32.mxu0 %vm1188_vm0, %v1187_v1 }
  0x4c   :  { %1043 = vmatprep.subr.mxu0 %v1187_v1  ;;  %1069 = vmatpush3.msra.mxu1 %v522_v12 }
  0x4d   :  { %1070 = vmatprep.mubr.msk.f32.mxu1 %vm1188_vm0, %v1187_v1  ;;  %1073 = vmatprep.subr.mxu1 %v1187_v1 }
  0x52   :  { %1041 = vmatmul.mubr.f32.vlgmr.msra.gmra.mrb[0].mxu0 %v141_v25  ;;  %1071 = vmatmul.mubr.f32.vlgmr.msra.gmra.mrb[0].mxu1 %v589_v29 }
  0x53   :  { %1044 = vmatpush3.msra.mxu0 %v152_v21  ;;  %1045 = vmatprep.mubr.msk.f32.mxu0 %vm1188_vm0, %v1187_v1 }
  0x54   :  { %1048 = vmatprep.subr.mxu0 %v1187_v1  ;;  %1074 = vmatpush3.msra.mxu1 %v600_v20 }
  0x55   :  { %1075 = vmatprep.mubr.msk.f32.mxu1 %vm1188_vm0, %v1187_v1  ;;  %1078 = vmatprep.subr.mxu1 %v1187_v1 }
  0x5a   :  { %1046 = vmatmul.mubr.f32.vlgmr.msra.gmra.mrb[0].mxu0 %v139_v18  ;;  %1076 = vmatmul.mubr.f32.vlgmr.msra.gmra.mrb[0].mxu1 %v587_v23 }
  0x5b   :  { %1049 = vmatpush3.msra.mxu0 %v74_v10  ;;  %1050 = vmatprep.mubr.msk.f32.mxu0 %vm1188_vm0, %v1187_v1 }
  0x5c   :  { %1079 = vmatpush3.msra.mxu1 %v522_v12  ;;  %1080 = vmatprep.mubr.msk.f32.mxu1 %vm1188_vm0, %v1187_v1 }
  0x62   :  { %1051 = vmatmul.mubr.f32.vlgmr.msra.gmra.mrb[0].mxu0 %v139_v18  ;;  %1081 = vmatmul.mubr.f32.vlgmr.msra.gmra.mrb[0].mxu1 %v587_v23 }
 0x135   :  { %v515_v35 = vpop.f32.mrb[0].mxu0  ;;  %v963_v37 = vpop.f32.mrb[0].mxu1 }
 0x136   :  { %v1052_v36 = vpop.f32.mrb[1].mxu0  ;;  %v970_v38 = vrot.slane %v963_v37, 7  ;;  %v1082_v39 = vpop.f32.mrb[1].mxu1 }
 0x138   :  { %v972_v41 = vsel %vm971_vm3, %v970_v38, %v515_v35 }
 0x139   :  { %v974_v42 = vadd.f32 %v972_v41, %v967_v40 }
 0x13b   :  { %976 = vst.msk [vmem:[#allocation2] sm:$0x3] %vm42_vm2, %v974_v42 }
 0x142   :  { %v980_v43 = vld [vmem:[#allocation2] sm:$0x3] }
 0x143   :  { %981 = vst.msk [vmem:[#allocation8] sm:$0x3] %vm42_vm2, %v980_v43 }
 0x144   :  { %1166 = shalt.err (!%p1163_p6)
}
 0x145   :  { %s1167_s10 = scalar_lea.hbm %s1293_s2, 32 }
 0x146   :  { %p1168_p7 = scmp.ne.s32.totalorder %s1293_s2, %s1167_s10  ;;  %p1171_p8 = scmp.lt.u32.totalorder %s1167_s10, %s1293_s2 }
 0x148   :  { %p1173_p9 = pnand %p1171_p8, %p1168_p7 }
 0x14a   :  { %1176 = shalt.err (!%p1173_p9)
}
 0x14b   :  { %991 = dma.vmem_to_hbm [thread:$0]  %s989_s6, 32, %s1293_s2, [#allocation5]  }
 0x14c   :  { %1181 = dma.done.wait [#allocation5], 32  }
 0x14d   :  { %1182 = vsyncadd [#allocation5], 4294967264 }
 0x14e   :  { %995 = vsyncpa [#allocation4], 1 }
 0x14f   :  { %996 = vsyncpa [#allocation7], 1 }
 0x150   :  { %997 = vsyncpa [#allocation5], 1 }

</bundles_post_ra>
